<compile_context>
chip_gen: v6e
topology: v6e:2x2x1
jax: 0.10.0
libtpu: 0.0.40
codegen_flags: <defaults>
</compile_context>

<pallas_src>
import jax
import jax.numpy as jnp
from jax.experimental import pallas as pl
from jax.experimental.pallas import tpu as pltpu

_TARGET_TILE_BYTES = 2 * 1024 * 1024  # ~2 MiB/tile; x2 buffers x (in+out) ~= 8 MiB VMEM


def _grl_bwd_kernel(coeff_ref, g_ref, o_ref):
    # grad_in = -coeff * grad_out.  coeff lives in SMEM (scalar path, free),
    # so distinct coeff values never force a kernel recompile.
    neg_coeff = (-coeff_ref[0]).astype(o_ref.dtype)
    o_ref[...] = g_ref[...] * neg_coeff


def _sublane_multiple(itemsize):
    # Min second-to-last tile multiple: 8 for 4-byte, 16 for 2-byte, 32 for 1-byte.
    return max(8, 8 * (4 // max(1, itemsize)))


def _choose_lane(n, sublane):
    # Widest lane-dense last dim that tiles n exactly; otherwise pad to 512 lanes.
    for lane in (2048, 1024, 512, 256, 128):
        if n % (sublane * lane) == 0:
            return lane
    return 512


def _reverse_scale(g, coeff):
    """Computes -coeff * g with a tiled, lane-dense, pipelined Pallas kernel."""
    orig_shape, dtype = g.shape, g.dtype
    n = g.size
    itemsize = jnp.dtype(dtype).itemsize
    sublane = _sublane_multiple(itemsize)
    lane = _choose_lane(n, sublane)
    chunk = sublane * lane
    n_pad = ((n + chunk - 1) // chunk) * chunk

    flat = g.reshape(-1)
    if n_pad != n:
        flat = jnp.pad(flat, (0, n_pad - n))
    rows = n_pad // lane          # guaranteed multiple of `sublane`
    g2d = flat.reshape(rows, lane)

    # Largest tile (multiple of `sublane` rows, exact divisor of `rows`)
    # staying around the 2 MiB target.
    max_rows = max(sublane,
                   (_TARGET_TILE_BYTES // (lane * itemsize)) // sublane * sublane)
    tile_rows = min(rows, max_rows)
    while rows % tile_rows != 0:
        tile_rows -= sublane

    coeff_arr = jnp.asarray(coeff, dtype=jnp.float32).reshape(1)

    out2d = pl.pallas_call(
        _grl_bwd_kernel,
        out_shape=jax.ShapeDtypeStruct((rows, lane), dtype),
        grid=(rows // tile_rows,),
        in_specs=[
            pl.BlockSpec(memory_space=pltpu.MemorySpace.SMEM),   # coeff scalar
            pl.BlockSpec((tile_rows, lane), lambda i: (i, 0)),   # grad tile
        ],
        out_specs=pl.BlockSpec((tile_rows, lane), lambda i: (i, 0)),
        input_output_aliases={1: 0},  # grad_out buffer is dead after VJP; reuse it
        compiler_params=pltpu.CompilerParams(
            dimension_semantics=("parallel",)),  # megacore-shard tiles on v7x
    )(coeff_arr, g2d)

    out = out2d.reshape(-1)
    if n_pad != n:
        out = out[:n]
    return out.reshape(orig_shape)


@jax.custom_vjp
def grl(x, coeff=1.0):
    # Forward is an exact identity (input * 1.0); no kernel is launched.
    return x


def _grl_vjp_fwd(x, coeff):
    return x, coeff


def _grl_vjp_bwd(coeff, g):
    # PyTorch returns None for coeff's grad; here a zero cotangent.
    dcoeff = jnp.zeros_like(jnp.asarray(coeff, dtype=jnp.float32))
    return _reverse_scale(g, coeff), dcoeff


grl.defvjp(_grl_vjp_fwd, _grl_vjp_bwd)


class GRL:
    """JAX/Pallas equivalent of the PyTorch GRL module (no parameters)."""

    def __call__(self, x, coeff=1.0):
        if isinstance(coeff, (int, float)):
            coeff = float(coeff)
        return grl(x, coeff)


if __name__ == "__main__":
    key = jax.random.PRNGKey(0)
    # NCHW, matching typical conv-feature input to a GRL in the source repo.
    x = jax.random.normal(key, (2, 4, 16, 16), dtype=jnp.float32)

    module = GRL()

    # Forward: exact identity.
    y = module(x, 1.0)
    jax.block_until_ready(y)
    assert y.shape == x.shape and y.dtype == x.dtype
    assert bool(jnp.all(y == x))

    # Backward: runs the Pallas gradient-reversal kernel (grad = -coeff).
    g = jax.grad(lambda v: jnp.sum(module(v, 1.0)))(x)
    jax.block_until_ready(g)
    assert g.shape == x.shape and g.dtype == x.dtype
    assert bool(jnp.allclose(g, -jnp.ones_like(x)))

    # A different, traced coeff value exercises the SMEM scalar path
    # (no recompilation of the Pallas kernel for a new coeff).
    g2 = jax.grad(lambda v: jnp.sum(module(v, jnp.float32(2.5))))(x)
    jax.block_until_ready(g2)
    assert bool(jnp.allclose(g2, -2.5 * jnp.ones_like(x)))

    print("KERNEL_OK")
</pallas_src>

<mosaic_0001>
module attributes {stable_mosaic.version = 11 : i64} {
  func.func @_grl_bwd_kernel(%arg0: i32, %arg1: memref<1xf32, #tpu.memory_space<smem>>, %arg2: memref<8x256xf32, #tpu.memory_space<vmem>>, %arg3: memref<8x256xf32, #tpu.memory_space<vmem>>) attributes {dimension_semantics = [#tpu.dimension_semantics<parallel>], iteration_bounds = array<i64: 1>, scalar_prefetch = 0 : i64, scratch_operands = 0 : i64, tpu.core_type = #tpu.core_type<tc>, window_params = [{transform_indices = @transform_0, window_bounds = array<i64: 1>}, {transform_indices = @transform_1, window_bounds = array<i64: 8, 256>}, {transform_indices = @transform_2, window_bounds = array<i64: 8, 256>}]} {
    %c0 = arith.constant 0 : index
    %0 = memref.load %arg1[%c0] : memref<1xf32, #tpu.memory_space<smem>>
    %cst = arith.constant 0.000000e+00 : f32
    %1 = arith.subf %cst, %0 : f32
    %c0_0 = arith.constant 0 : index
    %c0_1 = arith.constant 0 : index
    %2 = vector.load %arg2[%c0_0, %c0_1] : memref<8x256xf32, #tpu.memory_space<vmem>>, vector<8x256xf32>
    %3 = vector.broadcast %1 : f32 to vector<8x256xf32>
    %4 = arith.mulf %2, %3 : vector<8x256xf32>
    %c0_2 = arith.constant 0 : index
    %c0_3 = arith.constant 0 : index
    %5 = vector.load %arg3[%c0_2, %c0_3] : memref<8x256xf32, #tpu.memory_space<vmem>>, vector<8x256xf32>
    tpu.vector_store %arg3[%c0_2, %c0_3], %4 {strides = array<i32>} : memref<8x256xf32, #tpu.memory_space<vmem>>, vector<8x256xf32>,
    return
  }
  func.func @transform_0(%arg0: i32) -> i32 {
    %c0_i32 = arith.constant 0 : i32
    %c0_i32_0 = arith.constant 0 : i32
    return %c0_i32 : i32
  }
  func.func @transform_1(%arg0: i32) -> (i32, i32) {
    %c0_i32 = arith.constant 0 : i32
    %c0_i32_0 = arith.constant 0 : i32
    return %arg0, %c0_i32 : i32, i32
  }
  func.func @transform_2(%arg0: i32) -> (i32, i32) {
    %c0_i32 = arith.constant 0 : i32
    %c0_i32_0 = arith.constant 0 : i32
    return %arg0, %c0_i32 : i32, i32
  }
}

</mosaic_0001>

<bundles_post_ra>
// kernel: tpu_custom_call.1
= control target key start
LH: loop header
LB: loop body
LE: loop exit
PB: predicated region body
PF: predicated region fallthrough
CT: control target
= control target key end

     0   :  { %8 = vsyncpa [#allocation4], 0  ;;  %s121_s0 = inlined_call_operand.<no memory space> [shape: f32[1], index: 0, kind: input, shape index: {}]   ;;  %s122_s1 = inlined_call_operand.hbm [shape: f32[8,256], index: 1, kind: input, shape index: {}, may-alias: {1,2}]   ;;  %s123_s2 = inlined_call_operand.hbm [shape: f32[8,256], index: 2, kind: output, shape index: {}, may-alias: {1,2}]  }
   0x1   :  { %9 = vsyncpa [#allocation5], 0  ;;  %s95_s9 = smov [#allocation3]  }
   0x2   :  { %s18_s10 = sshll.u32 %s95_s9, 4  ;;  %s19_s10 = int_to_ptr.vmem [resolvable:$true] %s18_s10 }
   0x3   :  { %s59_s11 = scalar_lea.vmem %s19_s10, 256  ;;  %p64_p1 = scmp.lt.s32.totalorder %s19_s10, %s19_s10 }
   0x4   :  { %p60_p0 = scmp.ne.s32.totalorder %s19_s10, %s59_s11  ;;  %p65_p2 = scmp.lt.s32.totalorder %s59_s11, %s59_s11 }
   0x6   :  { %p66_p3 = por %p65_p2, %p64_p1 }
   0x8   :  { %p67_p4 = pnand %p66_p3, %p60_p0 }
   0xa   :  { %70 = shalt.err (!%p67_p4)
}
   0xb   :  { %21 = dma.hbm_to_vmem [thread:$0]  %s122_s1, 256, %s19_s10, [#allocation4]  }
   0xc   :  { %91 = dma.done.wait [#allocation4], 256  }
   0xd   :  { %92 = vsyncadd [#allocation4], 4294967040  ;;  %s26_s16 = ssub.f32 0.0, %s121_s0  ;;  %s96_s17 = smov [#allocation6]   ;;  %v27_v1 = vld [vmem:[#allocation3] sm:$0xff]  ;;  %v28_v2 = vld [vmem:[#allocation3 + $0x8] sm:$0xff] }
   0xe   :  { %s40_s18 = sshll.u32 %s96_s17, 4  ;;  %s41_s18 = int_to_ptr.vmem [resolvable:$true] %s40_s18 }
   0xf   :  { %v29_v0 = vstv %s26_s16  ;;  %s71_s19 = scalar_lea.vmem %s41_s18, 256  ;;  %p76_p6 = scmp.lt.s32.totalorder %s41_s18, %s41_s18 }
  0x10   :  { %v30_v3 = vmul.f32 %v29_v0, %v27_v1  ;;  %v31_v4 = vmul.f32 %v29_v0, %v28_v2  ;;  %p72_p5 = scmp.ne.s32.totalorder %s41_s18, %s71_s19  ;;  %p77_p7 = scmp.lt.s32.totalorder %s71_s19, %s71_s19 }
  0x12   :  { %32 = vst [vmem:[#allocation6] sm:$0xff] %v30_v3  ;;  %33 = vst [vmem:[#allocation6 + $0x8] sm:$0xff] %v31_v4  ;;  %p78_p8 = por %p77_p7, %p76_p6 }
  0x14   :  { %p79_p9 = pnand %p78_p8, %p72_p5 }
  0x16   :  { %82 = shalt.err (!%p79_p9)
}
  0x17   :  { %43 = dma.vmem_to_hbm [thread:$0]  %s41_s18, 256, %s123_s2, [#allocation5]  }
  0x18   :  { %93 = dma.done.wait [#allocation5], 256  }
  0x19   :  { %94 = vsyncadd [#allocation5], 4294967040 }
  0x1a   :  { %47 = vsyncpa [#allocation4], 1 }
  0x1b   :  { %48 = vsyncpa [#allocation5], 1 }

</bundles_post_ra>
